<compile_context>
chip_gen: v6e
topology: v6e:2x2x1
jax: 0.10.0
libtpu: 0.0.40
codegen_flags: <defaults>
</compile_context>

<pallas_src>
import jax
import jax.numpy as jnp
from jax.experimental import pallas as pl
from jax.experimental.pallas import tpu as pltpu

HIDDEN = 20          # Time_Transfer hidden width (lin1a / lin1b out_features)
H_PAD = 24           # 20 hidden rows + 1 rate row, padded to a sublane multiple
RATE_ROW = HIDDEN    # row of the fused weight holding the linear rate reduction
MAX_TILE_N = 2048    # event rows (lanes) processed per grid step


def _round_up(x, m):
    return (x + m - 1) // m * m


def timing_net_kernel(x_ref, w_ref, w2_ref, out_ref):
    """Fused Timing_Net forward on one tile of TILE_N event rows.

    x_ref  : (K_PAD, TILE_N)  packed [dt ; b ; c ; ones ; 0-pad] columns-as-events
    w_ref  : (H_PAD, K_PAD)   fused weight slab (hidden rows + rate row)
    w2_ref : (1, H_PAD)       lin2 weight row (zeros beyond HIDDEN)
    out_ref: (1, TILE_N)      lambda_dt for this tile (lane-dense store)
    """
    x = x_ref[...]
    w = w_ref[...]

    # Dot 1: hidden pre-activation (rows 0..19, bias folded via the ones row)
    #        and the linear rate term (row 20: w_b.b + w_c.c + lin2_bias).
    y = jnp.dot(w, x, preferred_element_type=jnp.float32)        # (H_PAD, TILE_N)
    rate_lin = y[RATE_ROW:RATE_ROW + 1, :]                        # (1, TILE_N)

    # sigmoid of all rows is safe: rows >= HIDDEN are zeroed by w2_row below.
    h = jax.nn.sigmoid(y)                                         # (H_PAD, TILE_N)

    # Dot 2: t_emb = lin2(sigmoid(hidden))  (bias already inside rate_lin).
    t_emb = jnp.dot(w2_ref[...], h, preferred_element_type=jnp.float32)  # (1, TILE_N)

    rate = rate_lin + t_emb

    # Softplus(beta=1, threshold=20) with PyTorch semantics (overflow-safe).
    out_ref[...] = jnp.where(rate > 20.0, rate,
                             jnp.log1p(jnp.exp(jnp.minimum(rate, 20.0))))


def init_params(key, embedding_b, embedding_c):
    ks = jax.random.split(key, 9)

    def u(k, shape, fan_in):
        bound = 1.0 / jnp.sqrt(jnp.float32(fan_in))
        return jax.random.uniform(k, shape, jnp.float32, -bound, bound)

    return {
        # Time_Transfer
        "lin1a_w": u(ks[0], (HIDDEN, 1), 1),
        "lin1a_b": u(ks[1], (HIDDEN,), 1),
        "lin1b_w": u(ks[2], (HIDDEN, 16), 16),
        "lin1b_b": u(ks[3], (HIDDEN,), 16),
        "lin2_w":  u(ks[4], (1, HIDDEN), HIDDEN),
        "lin2_b":  u(ks[5], (1,), HIDDEN),
        # Timing_Net raw parameters
        "w_b": jax.random.normal(ks[6], (embedding_b,), jnp.float32),
        "w_c": jax.random.normal(ks[7], (embedding_c,), jnp.float32),
        "base_rate": jax.random.normal(ks[8], (1,), jnp.float32),  # unused in forward
    }


@jax.jit
def timing_net_forward(params, mat_b, mat_c, arr_b_idx, arr_c_idx, arr_delta_t):
    # --- gather (pure-JAX glue; equivalent to torch.index_select along dim 1) ---
    # TODO(synk): fold this gather into the kernel via scalar-prefetched indices
    #             + VMEM-resident embedding tables to halve HBM traffic.
    b = mat_b[:, arr_b_idx[0], :]                    # (B, L, Eb)
    c = mat_c[:, arr_c_idx[0], :]                    # (B, L, Ec)
    dt = arr_delta_t.astype(jnp.float32)             # (B, L)

    B, L, Eb = b.shape
    Ec = c.shape[-1]
    assert Ec == 16, "Timing_Net: lin1b requires embedding_c == 16"
    N = B * L

    # Rows-on-lanes layout: features on sublanes, the N event rows on lanes.
    k = Eb + Ec + 2                                   # dt + b + c + ones(bias) rows
    k_pad = _round_up(k, 8)
    n_lane = _round_up(N, 128)
    tile_n = min(MAX_TILE_N, n_lane)
    n_pad = _round_up(N, tile_n)

    x = jnp.concatenate(
        [dt.reshape(1, N),
         b.reshape(N, Eb).astype(jnp.float32).T,
         c.reshape(N, Ec).astype(jnp.float32).T,
         jnp.ones((1, N), jnp.float32)],
        axis=0)                                       # (k, N)
    x = jnp.pad(x, ((0, k_pad - k), (0, n_pad - N)))  # (k_pad, n_pad)

    # Fused weight slab.  Column layout matches x: [dt | b | c | ones | pad].
    w_all = jnp.zeros((H_PAD, k_pad), jnp.float32)
    w_all = w_all.at[:HIDDEN, 0:1].set(params["lin1a_w"])                      # lin1a
    w_all = w_all.at[:HIDDEN, Eb + 1:Eb + 1 + Ec].set(params["lin1b_w"])       # lin1b
    w_all = w_all.at[:HIDDEN, Eb + Ec + 1].set(params["lin1a_b"] + params["lin1b_b"])
    w_all = w_all.at[RATE_ROW, 1:Eb + 1].set(params["w_b"])                    # w_b.b
    w_all = w_all.at[RATE_ROW, Eb + 1:Eb + 1 + Ec].set(params["w_c"])          # w_c.c
    w_all = w_all.at[RATE_ROW, Eb + Ec + 1].set(params["lin2_b"][0])           # lin2 bias

    w2_row = jnp.zeros((1, H_PAD), jnp.float32)
    w2_row = w2_row.at[0, :HIDDEN].set(params["lin2_w"][0])                    # lin2

    grid = (n_pad // tile_n,)
    out = pl.pallas_call(
        timing_net_kernel,
        out_shape=jax.ShapeDtypeStruct((1, n_pad), jnp.float32),
        grid_spec=pltpu.PrefetchScalarGridSpec(
            num_scalar_prefetch=0,
            grid=grid,
            in_specs=[
                pl.BlockSpec((k_pad, tile_n), lambda i: (0, i)),   # streaming events
                pl.BlockSpec((H_PAD, k_pad), lambda i: (0, 0)),    # VMEM-resident slab
                pl.BlockSpec((1, H_PAD), lambda i: (0, 0)),        # VMEM-resident lin2
            ],
            out_specs=pl.BlockSpec((1, tile_n), lambda i: (0, i)),
        ),
        compiler_params=pltpu.CompilerParams(
            dimension_semantics=("parallel",)),
    )(x, w_all, w2_row)

    return out[0, :N].reshape(B, L)                   # lambda_dt: (B, L)


def reference_forward(params, mat_b, mat_c, arr_b_idx, arr_c_idx, arr_delta_t):
    b = mat_b[:, arr_b_idx[0], :]
    c = mat_c[:, arr_c_idx[0], :]
    dt = arr_delta_t.astype(jnp.float32)
    x1a = dt[..., None] @ params["lin1a_w"].T + params["lin1a_b"]
    x1b = c @ params["lin1b_w"].T + params["lin1b_b"]
    xa = jax.nn.sigmoid(x1a + x1b)
    t_emb = xa @ params["lin2_w"].T + params["lin2_b"]
    rate = (jnp.einsum("ble,e->bl", b, params["w_b"])
            + jnp.einsum("ble,e->bl", c, params["w_c"])
            + t_emb[..., 0])
    return jnp.where(rate > 20.0, rate, jnp.log1p(jnp.exp(jnp.minimum(rate, 20.0))))


if __name__ == "__main__":
    key = jax.random.PRNGKey(0)
    k_param, k_b, k_c, k_ib, k_ic, k_dt = jax.random.split(key, 6)

    # Shapes implied by the module: embedding_c must be 16 (lin1b in_features).
    B, L1, L2, L = 2, 16, 16, 8
    embedding_b, embedding_c = 8, 16

    params = init_params(k_param, embedding_b, embedding_c)

    mat_b = jax.random.normal(k_b, (B, L1, embedding_b), jnp.float32)
    mat_c = jax.random.normal(k_c, (B, L2, embedding_c), jnp.float32)
    arr_b_idx = jax.random.randint(k_ib, (B, L), 0, L1, jnp.int32)
    arr_c_idx = jax.random.randint(k_ic, (B, L), 0, L2, jnp.int32)
    arr_delta_t = jax.random.uniform(k_dt, (B, L), jnp.float32, 0.0, 5.0)

    lambda_dt = timing_net_forward(params, mat_b, mat_c,
                                   arr_b_idx, arr_c_idx, arr_delta_t)
    lambda_dt = jax.block_until_ready(lambda_dt)

    ref = reference_forward(params, mat_b, mat_c, arr_b_idx, arr_c_idx, arr_delta_t)
    assert lambda_dt.shape == (B, L)
    assert jnp.allclose(lambda_dt, ref, atol=1e-4, rtol=1e-4)

    print("KERNEL_OK")
</pallas_src>

<mosaic_0001>
module attributes {stable_mosaic.version = 11 : i64} {
  func.func @timing_net_kernel(%arg0: i32, %arg1: memref<32x128xf32, #tpu.memory_space<vmem>>, %arg2: memref<24x32xf32, #tpu.memory_space<vmem>>, %arg3: memref<1x24xf32, #tpu.memory_space<vmem>>, %arg4: memref<1x128xf32, #tpu.memory_space<vmem>>) attributes {dimension_semantics = [#tpu.dimension_semantics<parallel>], iteration_bounds = array<i64: 1>, scalar_prefetch = 0 : i64, scratch_operands = 0 : i64, tpu.core_type = #tpu.core_type<tc>, window_params = [{transform_indices = @transform_0, window_bounds = array<i64: 32, 128>}, {pipeline_mode = #tpu.pipeline_mode<synchronous>, transform_indices = @transform_1, window_bounds = array<i64: 24, 32>}, {pipeline_mode = #tpu.pipeline_mode<synchronous>, transform_indices = @transform_2, window_bounds = array<i64: 1, 24>}, {transform_indices = @transform_3, window_bounds = array<i64: 1, 128>}]} {
    %c0 = arith.constant 0 : index
    %c0_0 = arith.constant 0 : index
    %0 = vector.load %arg1[%c0, %c0_0] : memref<32x128xf32, #tpu.memory_space<vmem>>, vector<32x128xf32>
    %c0_1 = arith.constant 0 : index
    %c0_2 = arith.constant 0 : index
    %1 = vector.load %arg2[%c0_1, %c0_2] : memref<24x32xf32, #tpu.memory_space<vmem>>, vector<24x32xf32>
    %cst = arith.constant dense<0.000000e+00> : vector<24x128xf32>
    %2 = tpu.matmul %1, %0, %cst {dimension_numbers = #tpu.dot_dimension_numbers<[1], [0], [0], [1], [0, 0, 1, 1], [], []>} : vector<24x32xf32>, vector<32x128xf32>, vector<24x128xf32> -> vector<24x128xf32>
    %3 = vector.extract_strided_slice %2 {offsets = [20, 0], sizes = [1, 128], strides = [1, 1]} : vector<24x128xf32> to vector<1x128xf32>
    %4 = arith.negf %2 : vector<24x128xf32>
    %5 = math.exp %4 : vector<24x128xf32>
    %cst_3 = arith.constant 1.000000e+00 : f32
    %6 = vector.broadcast %cst_3 : f32 to vector<24x128xf32>
    %7 = arith.addf %6, %5 : vector<24x128xf32>
    %8 = arith.divf %6, %7 : vector<24x128xf32>
    %c0_4 = arith.constant 0 : index
    %c0_5 = arith.constant 0 : index
    %9 = vector.load %arg3[%c0_4, %c0_5] : memref<1x24xf32, #tpu.memory_space<vmem>>, vector<1x24xf32>
    %cst_6 = arith.constant dense<0.000000e+00> : vector<1x128xf32>
    %10 = tpu.matmul %9, %8, %cst_6 {dimension_numbers = #tpu.dot_dimension_numbers<[1], [0], [0], [1], [0, 0, 1, 1], [], []>} : vector<1x24xf32>, vector<24x128xf32>, vector<1x128xf32> -> vector<1x128xf32>
    %11 = arith.addf %3, %10 : vector<1x128xf32>
    %cst_7 = arith.constant 2.000000e+01 : f32
    %12 = vector.broadcast %cst_7 : f32 to vector<1x128xf32>
    %13 = arith.cmpf ogt, %11, %12 : vector<1x128xf32>
    %cst_8 = arith.constant 2.000000e+01 : f32
    %14 = vector.broadcast %cst_8 : f32 to vector<1x128xf32>
    %15 = arith.minimumf %11, %14 : vector<1x128xf32>
    %16 = math.exp %15 : vector<1x128xf32>
    %17 = math.log1p %16 : vector<1x128xf32>
    %18 = arith.select %13, %11, %17 : vector<1x128xi1>, vector<1x128xf32>
    %c0_9 = arith.constant 0 : index
    %c0_10 = arith.constant 0 : index
    %19 = vector.load %arg4[%c0_9, %c0_10] : memref<1x128xf32, #tpu.memory_space<vmem>>, vector<1x128xf32>
    tpu.vector_store %arg4[%c0_9, %c0_10], %18 {strides = array<i32>} : memref<1x128xf32, #tpu.memory_space<vmem>>, vector<1x128xf32>,
    return
  }
  func.func @transform_0(%arg0: i32) -> (i32, i32) {
    %c0_i32 = arith.constant 0 : i32
    %c0_i32_0 = arith.constant 0 : i32
    return %c0_i32, %arg0 : i32, i32
  }
  func.func @transform_1(%arg0: i32) -> (i32, i32) {
    %c0_i32 = arith.constant 0 : i32
    %c0_i32_0 = arith.constant 0 : i32
    %c0_i32_1 = arith.constant 0 : i32
    return %c0_i32, %c0_i32_0 : i32, i32
  }
  func.func @transform_2(%arg0: i32) -> (i32, i32) {
    %c0_i32 = arith.constant 0 : i32
    %c0_i32_0 = arith.constant 0 : i32
    %c0_i32_1 = arith.constant 0 : i32
    return %c0_i32, %c0_i32_0 : i32, i32
  }
  func.func @transform_3(%arg0: i32) -> (i32, i32) {
    %c0_i32 = arith.constant 0 : i32
    %c0_i32_0 = arith.constant 0 : i32
    return %c0_i32, %arg0 : i32, i32
  }
}

</mosaic_0001>

<bundles_post_ra>
// kernel: squeeze.9
= control target key start
LH: loop header
LB: loop body
LE: loop exit
PB: predicated region body
PF: predicated region fallthrough
CT: control target
= control target key end

     0   :  { %s77_s0 = inlined_call_operand.vmem [shape: f32[16], index: 0, kind: input, shape index: {}]   ;;  %s78_s1 = inlined_call_operand.hbm [shape: f32[2,8], index: 1, kind: output, shape index: {}]  }
   0x1   :  { %v6_v0 = vld [vmem:[%s77_s0] sm:$0x1] }
   0x2   :  { %2 = vsyncpa [#allocation1], 0  ;;  %7 = vst [vmem:[#allocation3] sm:$0x1] %v6_v0  ;;  %vm9_vm0 = vcmask 64512   ;;  %s59_s0 = smov 120  }
   0x3   :  { %s60_s8 = smov [#allocation0]  }
   0x4   :  { %s29_s9 = sshll.u32 %s60_s8, 4  ;;  %s30_s9 = int_to_ptr.vmem [resolvable:$true] %s29_s9 }
   0x5   :  { %s37_s10 = scalar_lea.vmem %s30_s9, 32  ;;  %p42_p1 = scmp.lt.s32.totalorder %s30_s9, %s30_s9 }
   0x6   :  { %p38_p0 = scmp.ne.s32.totalorder %s30_s9, %s37_s10  ;;  %p43_p2 = scmp.lt.s32.totalorder %s37_s10, %s37_s10 }
   0x8   :  { %p44_p3 = por %p43_p2, %p42_p1 }
   0x9   :  { %v11_v1 = vld [vmem:[#allocation3] sm:$0x1]  }
   0xa   :  { %v8_v2 = vld [vmem:[#allocation3] sm:$0x1]   ;;  %12 = vrot.lane.b32.xlu0 %v11_v1, %s59_s0  ;;  %p45_p4 = pnand %p44_p3, %p38_p0 }
   0xb   :  { %10 = vst.msk [vmem:[#allocation2] sm:$0x1] %vm9_vm0, %v8_v2  }
  0x7c   :  { %v13_v3 = vpop.permute.xlu0 %12  }
  0x7d   :  { %16 = vst.msk [vmem:[#allocation2 + $0x1] sm:$0x1] %vm9_vm0, %v13_v3  }
  0x84   :  { %v21_v4 = vld [vmem:[#allocation2] sm:$0x3] }
  0x85   :  { %24 = vst [vmem:[#allocation0] sm:$0x3] %v21_v4 }
  0x86   :  { %48 = shalt.err (!%p45_p4)
}
  0x87   :  { %32 = dma.vmem_to_hbm [thread:$0]  %s30_s9, 32, %s78_s1, [#allocation1]  }
  0x88   :  { %57 = dma.done.wait [#allocation1], 32  }
  0x89   :  { %58 = vsyncadd [#allocation1], 4294967264 }
  0x8a   :  { %34 = vsyncpa [#allocation1], 1 }

// kernel: timing_net_forward.1
= control target key start
LH: loop header
LB: loop body
LE: loop exit
PB: predicated region body
PF: predicated region fallthrough
CT: control target
= control target key end

     0   :  { %v289_v0 = vmov 0.0   ;;  %vm290_vm0 = vmmov 0   ;;  %vm21_vm1 = vcmask 261120   ;;  %vm130_vm2 = vcmask 195584   ;;  %s342_s0 = inlined_call_operand.vmem [shape: f32[32,128], index: 0, kind: input, shape index: {}]   ;;  %s343_s1 = inlined_call_operand.vmem [shape: f32[24,32], index: 1, kind: input, shape index: {}]   ;;  %s344_s2 = inlined_call_operand.vmem [shape: f32[1,24], index: 2, kind: input, shape index: {}]   ;;  %s345_s3 = inlined_call_operand.vmem [shape: f32[1,128], index: 3, kind: output, shape index: {}]  }
   0x1   :  { %245 = vmatprep.subr.mxu0 %v289_v0  ;;  %v17_v1 = vld [vmem:[%s342_s0 + $0x18] sm:$0xff]  ;;  %v16_v2 = vld [vmem:[%s342_s0 + $0x10] sm:$0xff]  ;;  %253 = vmatprep.mubr.msk.f32.mxu0 %vm290_vm0, %v289_v0  ;;  %v15_v3 = vld [vmem:[%s342_s0 + $0x8] sm:$0xff] }
   0x2   :  { %246 = vmatpush3.msra.mxu0 %v17_v1  ;;  %262 = vmatprep.subr.mxu1 %v289_v0  ;;  %v14_v4 = vld [vmem:[%s342_s0] sm:$0xff]  ;;  %v19_v6 = vld [vmem:[%s343_s1 + $0x8] sm:$0xff]  ;;  %v20_v7 = vld [vmem:[%s343_s1 + $0x10] sm:$0xff] }
   0x3   :  { %247 = vmatprep.subr.mxu0 %v289_v0  ;;  %268 = vmatprep.mubr.msk.f32.mxu1 %vm290_vm0, %v289_v0  ;;  %v18_v5 = vld [vmem:[%s343_s1] sm:$0xff] }
   0x4   :  { %248 = vmatpush3.msra.mxu0 %v16_v2  ;;  %v129_v25 = vld [vmem:[%s344_s2] sm:$0x1] }
   0x5   :  { %249 = vmatprep.subr.mxu0 %v289_v0 }
   0x6   :  { %250 = vmatpush3.msra.mxu0 %v15_v3 }
   0x7   :  { %251 = vmatprep.subr.mxu0 %v289_v0 }
   0x8   :  { %252 = vmatpush3.msra.mxu0 %v14_v4 }
   0x9   :  { %254 = vmatmul.mubr.msk.f32.vlgmr.msra.gmra.mxu0 %vm21_vm1, %v18_v5 }
   0xa   :  { %256 = vmatprep.mubr.msk.f32.mxu0 %vm290_vm0, %v289_v0 }
   0xd   :  { %257 = vmatmul.mubr.msk.f32.gmra.mxu0 %vm21_vm1, %v19_v6 }
   0xe   :  { %259 = vmatprep.mubr.msk.f32.mxu0 %vm290_vm0, %v289_v0 }
  0x11   :  { %260 = vmatmul.mubr.msk.f32.gmra.mxu0 %vm21_vm1, %v20_v7 }
  0xc9   :  { %v97_v8 = vpop.f32.mrf.mxu0 }
  0xca   :  { %v230_v12 = vmul.f32 -1.442695, %v97_v8 }
  0xcb   :  { %v255_v9 = vpop.f32.mrf.mxu0 }
  0xcd   :  { %v102_v10 = vpop.f32.mrf.mxu0 }
  0xce   :  { %v231_v11 = vmul.f32 -1.442695, %v102_v10 }
  0xcf   :  { %v258_v13 = vpop.f32.mrf.mxu0 }
  0xd0   :  { %273 = vpow2.f32 %v231_v11 }
  0xd1   :  { %v107_v14 = vpop.f32.mrf.mxu0  ;;  %275 = vpow2.f32 %v230_v12 }
  0xd2   :  { %v232_v15 = vmul.f32 -1.442695, %v107_v14 }
  0xd3   :  { %v261_v16 = vpop.f32.mrf.mxu0 }
  0xd4   :  { %277 = vpow2.f32 %v232_v15 }
  0xdd   :  { %v274_v17 = vpop.eup %273 }
  0xde   :  { %v276_v18 = vpop.eup %275  ;;  %v121_v20 = vadd.f32 1.0, %v274_v17 }
  0xdf   :  { %v120_v22 = vadd.f32 1.0, %v276_v18 }
  0xe1   :  { %v278_v19 = vpop.eup %277 }
  0xe2   :  { %v122_v21 = vadd.f32 1.0, %v278_v19 }
  0xe4   :  { %279 = vrcp.f32 %v122_v21 }
  0xe5   :  { %281 = vrcp.f32 %v121_v20 }
  0xe6   :  { %283 = vrcp.f32 %v120_v22 }
  0xf1   :  { %v280_v23 = vpop.eup %279 }
  0xf2   :  { %263 = vmatpush3.msra.mxu1 %v280_v23  ;;  %v282_v24 = vpop.eup %281 }
  0xf3   :  { %264 = vmatprep.subr.mxu1 %v289_v0  ;;  %v284_v26 = vpop.eup %283 }
  0xf4   :  { %265 = vmatpush3.msra.mxu1 %v282_v24 }
  0xf5   :  { %266 = vmatprep.subr.mxu1 %v289_v0 }
  0xf6   :  { %267 = vmatpush3.msra.mxu1 %v284_v26 }
  0xf7   :  { %269 = vmatmul.mubr.msk.f32.vlgmr.msra.gmra.mxu1 %vm130_vm2, %v129_v25 }
 0x1b7   :  { %v200_v27 = vpop.f32.mrf.mxu1 }
 0x1b8   :  { %v205_v28 = vrot.slane %v200_v27, 4 }
 0x1b9   :  { %v270_v29 = vpop.f32.mrf.mxu1 }
 0x1ba   :  { %v207_v30 = vadd.f32 %v205_v28, %v107_v14 }
 0x1bc   :  { %v209_v31 = vmin.f32 %v207_v30, 20.0  ;;  %vm208_vm4 = vcmp.gt.f32.partialorder %v207_v30, 20.0 }
 0x1be   :  { %v210_v32 = vmul.f32 1.442695, %v209_v31 }
 0x1c0   :  { %285 = vpow2.f32 %v210_v32 }
 0x1cd   :  { %v286_v33 = vpop.eup %285 }
 0x1ce   :  { %v212_v34 = vadd.f32 1.0, %v286_v33  ;;  %v215_v35 = vmul.f32 -0.5, %v286_v33  ;;  %v218_v37 = vand.u32 2147483647, %v286_v33 }
 0x1d0   :  { %287 = vlog2.f32 %v212_v34  ;;  %v216_v36 = vadd.f32 1.0, %v215_v35  ;;  %vm219_vm3 = vcmp.lt.f32.partialorder %v218_v37, 0.0004427343 }
 0x1d2   :  { %v217_v40 = vmul.f32 %v286_v33, %v216_v36 }
 0x1dd   :  { %v288_v38 = vpop.eup %287 }
 0x1de   :  { %v214_v39 = vmul.f32 0.6931472, %v288_v38 }
 0x1e0   :  { %v220_v41 = vsel %vm219_vm3, %v217_v40, %v214_v39 }
 0x1e1   :  { %v221_v42 = vsel %vm208_vm4, %v207_v30, %v220_v41 }
 0x1e2   :  { %222 = vst [vmem:[%s345_s3 - $0x4] sm:$0x10] %v221_v42 }

</bundles_post_ra>
